<compile_context>
chip_gen: v6e
topology: v6e:2x2x1
jax: 0.10.0
libtpu: 0.0.40
codegen_flags: <defaults>
</compile_context>

<pallas_src>
import math
import functools
import numpy as np
import jax
import jax.numpy as jnp
from jax.experimental import pallas as pl
from jax.experimental.pallas import tpu as pltpu


# ----------------------------- Pallas kernel -------------------------------

def _poscov_kernel(x_ref, pe_ref, wx_ref, wpe_ref, b_ref, out_ref, *, K, L_out_pad):
    # x_ref:   (1, Cin, Lcols)    zero-padded activations for this batch element
    # pe_ref:  (Cin, Lcols)       zero-padded positional encoding (constant block
    #                             index -> resident in VMEM across grid steps)
    # wx_ref:  (K, Cout, Cin)     conv taps applied to x
    # wpe_ref: (K, Cout, Cin)     conv taps applied to pe
    # b_ref:   (Cout, 1)          conv bias (f32)
    # out_ref: (1, Cout, L_out_pad)  lane-dense output tile (L_out_pad % 128 == 0)
    x = x_ref[0]
    pe = pe_ref[...]
    cout = out_ref.shape[1]
    acc = jnp.zeros((cout, L_out_pad), jnp.float32)
    for k in range(K):                       # K is tiny (3): unrolled at trace time
        xk = x[:, k:k + L_out_pad]           # static shifted window; lane relayout
        pk = pe[:, k:k + L_out_pad]          # hits the XLU slot (idle here)
        acc = acc + jnp.dot(wx_ref[k], xk, preferred_element_type=jnp.float32)
        acc = acc + jnp.dot(wpe_ref[k], pk, preferred_element_type=jnp.float32)
    out_ref[0] = (acc + b_ref[...]).astype(out_ref.dtype)


# ------------------------------ glue / wrapper ------------------------------

def make_positional_encoding(d_model, max_len):
    """Matches PositionalEncoding.__init__; returns (1, d_model, max_len)."""
    pe = np.zeros((max_len, d_model), dtype=np.float32)
    position = np.arange(0, max_len, dtype=np.float32)[:, None]
    div_term = np.exp(np.arange(0, d_model, 2, dtype=np.float32)
                      * -(math.log(10000.0) / d_model))
    pe[:, 0::2] = np.sin(position * div_term)
    if pe[:, 1::2].shape[1] % 2 == 1:
        pe[:, 1::2] = np.cos(position * div_term)[:, :-1]
    else:
        pe[:, 1::2] = np.cos(position * div_term)
    pe = pe.T[None]  # (1, d_model, max_len)
    return jnp.asarray(pe)


def init_poscov_params(key, input_nc, output_nc, ks=3, padding=1,
                       concat=False, max_len=500):
    """Deterministic synthetic parameters (PyTorch Conv1d weight shapes)."""
    cin_eff = input_nc * 2 if concat else input_nc
    kw, kb = jax.random.split(key)
    bound = 1.0 / math.sqrt(cin_eff * ks)
    w = jax.random.uniform(kw, (output_nc, cin_eff, ks), jnp.float32, -bound, bound)
    b = jax.random.uniform(kb, (output_nc,), jnp.float32, -bound, bound)
    return {
        "w": w, "b": b, "ks": ks, "padding": padding, "max_len": max_len,
        "pe": make_positional_encoding(input_nc, max_len),
    }


def _pe_for_length(pe, L, max_len):
    """PositionalEncoding.forward: slice, or reflection-pad when L > max_len."""
    if L <= max_len:
        return pe[:, :, :L]
    pad = (L - max_len) // 2
    # nn.ReflectionPad1d(pad) applied to pe[:, :, :max_len]  (requires pad < max_len)
    return jnp.pad(pe[:, :, :max_len], ((0, 0), (0, 0), (pad, pad)), mode="reflect")


def poscov_forward(x, params, concat=False, use_bf16_matmul=False):
    # TODO(synk): stride/dilation != 1 Conv1d kwargs are not implemented.
    N, Cin, L = x.shape
    K = params["ks"]
    pw = params["padding"]

    pe = _pe_for_length(params["pe"], L, params["max_len"])[0]   # (Cin, L_pe)
    if pe.shape[1] != L:
        # (L - max_len) odd -> PE length L-1; the PyTorch module fails here too.
        raise ValueError("PE length mismatch (odd L - max_len), as in PyTorch.")

    Cout = params["w"].shape[0]
    L_out = L + 2 * pw - K + 1
    L_out_pad = max(128, -(-L_out // 128) * 128)   # lane-dense output stores
    Lcols = L_out_pad + K - 1                      # input window incl. conv halo

    # Single zero-pad along L: conv halo on the left, halo + 128-rounding on the
    # right.  Extra columns only feed output positions >= L_out, sliced off below.
    x_pad = jnp.pad(x, ((0, 0), (0, 0), (pw, Lcols - L - pw)))        # (N, Cin, Lcols)
    pe_pad = jnp.pad(pe, ((0, 0), (pw, Lcols - L - pw)))              # (Cin, Lcols)

    w = params["w"]                                # (Cout, Cin_eff, K)
    if concat:
        wx, wpe = w[:, :Cin, :], w[:, Cin:, :]
    else:
        # conv(x + pe) == conv_w(x) + conv_w(pe): same taps on both operands, so
        # neither x+pe nor a broadcast/concat of pe is ever materialized in HBM.
        wx = wpe = w
    wx = jnp.transpose(wx, (2, 0, 1))              # (K, Cout, Cin)
    wpe = jnp.transpose(wpe, (2, 0, 1))            # (K, Cout, Cin)
    b = params["b"][:, None]                       # (Cout, 1), stays f32

    if use_bf16_matmul:
        # bf16 MXU operands (native on all generations); f32 accumulation via
        # preferred_element_type, bias add and output stay f32.
        x_pad = x_pad.astype(jnp.bfloat16)
        pe_pad = pe_pad.astype(jnp.bfloat16)
        wx = wx.astype(jnp.bfloat16)
        wpe = wpe.astype(jnp.bfloat16)

    kernel = functools.partial(_poscov_kernel, K=K, L_out_pad=L_out_pad)

    out = pl.pallas_call(
        kernel,
        out_shape=jax.ShapeDtypeStruct((N, Cout, L_out_pad), x.dtype),
        grid_spec=pltpu.PrefetchScalarGridSpec(
            num_scalar_prefetch=0,
            grid=(N,),
            in_specs=[
                pl.BlockSpec((1, Cin, Lcols), lambda n: (n, 0, 0)),
                pl.BlockSpec((Cin, Lcols), lambda n: (0, 0)),
                pl.BlockSpec((K, Cout, Cin), lambda n: (0, 0, 0)),
                pl.BlockSpec((K, Cout, Cin), lambda n: (0, 0, 0)),
                pl.BlockSpec((Cout, 1), lambda n: (0, 0)),
            ],
            out_specs=pl.BlockSpec((1, Cout, L_out_pad), lambda n: (n, 0, 0)),
        ),
        compiler_params=pltpu.CompilerParams(
            dimension_semantics=("parallel",)),
    )(x_pad, pe_pad, wx, wpe, b)

    # Output already in (N, Cout, L) layout — only strip the 128-lane padding.
    # TODO(synk): for extremely long sequences (Lcols*Cin*4B approaching the
    # scoped VMEM limit) an additional L-tile grid axis with a K-1 halo would be
    # needed; not required for the shapes this module is used with.
    return out[:, :, :L_out]


# ----------------------------- pure-JAX reference ---------------------------

def poscov_reference(x, params, concat=False):
    N, Cin, L = x.shape
    pe = _pe_for_length(params["pe"], L, params["max_len"])
    if concat:
        ret = jnp.concatenate([x, jnp.broadcast_to(pe, (N, Cin, pe.shape[2]))], axis=1)
    else:
        ret = x + pe
    pw = params["padding"]
    out = jax.lax.conv_general_dilated(
        ret, params["w"], window_strides=(1,), padding=[(pw, pw)],
        dimension_numbers=("NCH", "OIH", "NCH"))
    return out + params["b"][None, :, None]


# ----------------------------------- main -----------------------------------

if __name__ == "__main__":
    key = jax.random.PRNGKey(0)

    # (input_nc, output_nc, batch, L, max_len, concat)
    configs = [
        (4, 8, 2, 16, 500, False),   # x + pe path, single 128-wide output tile
        (4, 8, 2, 16, 500, True),    # concat path (conv sees 2*input_nc channels)
        (4, 8, 2, 160, 64, False),   # L > max_len reflection-pad path (256-wide tile)
    ]

    for (cin, cout, n, l, max_len, concat) in configs:
        k_x, k_p, key = jax.random.split(key, 3)
        x = jax.random.normal(k_x, (n, cin, l), jnp.float32)
        params = init_poscov_params(k_p, cin, cout, ks=3, padding=1,
                                    concat=concat, max_len=max_len)

        out = poscov_forward(x, params, concat=concat)
        out = jax.block_until_ready(out)

        ref = poscov_reference(x, params, concat=concat)
        np.testing.assert_allclose(np.asarray(out), np.asarray(ref),
                                   rtol=1e-4, atol=1e-4)

    # Exercise the bf16-operand path (v5e/v6e/v7x bandwidth optimization) at a
    # tolerance appropriate for bf16 inputs.
    k_x, k_p, key = jax.random.split(key, 3)
    x = jax.random.normal(k_x, (2, 4, 16), jnp.float32)
    params = init_poscov_params(k_p, 4, 8, ks=3, padding=1, concat=False, max_len=500)
    out_bf16 = jax.block_until_ready(
        poscov_forward(x, params, concat=False, use_bf16_matmul=True))
    ref = poscov_reference(x, params, concat=False)
    np.testing.assert_allclose(np.asarray(out_bf16), np.asarray(ref),
                               rtol=5e-2, atol=5e-2)

    print("KERNEL_OK")
</pallas_src>

<mosaic_0001>
module attributes {stable_mosaic.version = 11 : i64} {
  func.func @_poscov_kernel(%arg0: i32, %arg1: memref<1x4x130xf32, #tpu.memory_space<vmem>>, %arg2: memref<4x130xf32, #tpu.memory_space<vmem>>, %arg3: memref<3x8x4xf32, #tpu.memory_space<vmem>>, %arg4: memref<3x8x4xf32, #tpu.memory_space<vmem>>, %arg5: memref<8x1xf32, #tpu.memory_space<vmem>>, %arg6: memref<1x8x128xf32, #tpu.memory_space<vmem>>) attributes {dimension_semantics = [#tpu.dimension_semantics<parallel>], iteration_bounds = array<i64: 2>, scalar_prefetch = 0 : i64, scratch_operands = 0 : i64, tpu.core_type = #tpu.core_type<tc>, window_params = [{transform_indices = @transform_0, window_bounds = array<i64: 1, 4, 130>}, {pipeline_mode = #tpu.pipeline_mode<synchronous>, transform_indices = @transform_1, window_bounds = array<i64: 4, 130>}, {pipeline_mode = #tpu.pipeline_mode<synchronous>, transform_indices = @transform_2, window_bounds = array<i64: 3, 8, 4>}, {pipeline_mode = #tpu.pipeline_mode<synchronous>, transform_indices = @transform_3, window_bounds = array<i64: 3, 8, 4>}, {pipeline_mode = #tpu.pipeline_mode<synchronous>, transform_indices = @transform_4, window_bounds = array<i64: 8, 1>}, {transform_indices = @transform_5, window_bounds = array<i64: 1, 8, 128>}]} {
    %c0 = arith.constant 0 : index
    %c0_0 = arith.constant 0 : index
    %c0_1 = arith.constant 0 : index
    %0 = vector.load %arg1[%c0, %c0_0, %c0_1] : memref<1x4x130xf32, #tpu.memory_space<vmem>>, vector<1x4x130xf32>
    %1 = vector.shape_cast %0 : vector<1x4x130xf32> to vector<4x130xf32>
    %c0_2 = arith.constant 0 : index
    %c0_3 = arith.constant 0 : index
    %2 = vector.load %arg2[%c0_2, %c0_3] : memref<4x130xf32, #tpu.memory_space<vmem>>, vector<4x130xf32>
    %cst = arith.constant 0.000000e+00 : f32
    %3 = vector.broadcast %cst : f32 to vector<8x128xf32>
    %4 = vector.extract_strided_slice %1 {offsets = [0, 0], sizes = [4, 128], strides = [1, 1]} : vector<4x130xf32> to vector<4x128xf32>
    %5 = vector.extract_strided_slice %2 {offsets = [0, 0], sizes = [4, 128], strides = [1, 1]} : vector<4x130xf32> to vector<4x128xf32>
    %c0_4 = arith.constant 0 : index
    %c0_5 = arith.constant 0 : index
    %c0_6 = arith.constant 0 : index
    %6 = vector.load %arg3[%c0_4, %c0_5, %c0_6] : memref<3x8x4xf32, #tpu.memory_space<vmem>>, vector<1x8x4xf32>
    %7 = vector.shape_cast %6 : vector<1x8x4xf32> to vector<8x4xf32>
    %cst_7 = arith.constant dense<0.000000e+00> : vector<8x128xf32>
    %8 = tpu.matmul %7, %4, %cst_7 {dimension_numbers = #tpu.dot_dimension_numbers<[1], [0], [0], [1], [0, 0, 1, 1], [], []>} : vector<8x4xf32>, vector<4x128xf32>, vector<8x128xf32> -> vector<8x128xf32>
    %9 = arith.addf %3, %8 : vector<8x128xf32>
    %c0_8 = arith.constant 0 : index
    %c0_9 = arith.constant 0 : index
    %c0_10 = arith.constant 0 : index
    %10 = vector.load %arg4[%c0_8, %c0_9, %c0_10] : memref<3x8x4xf32, #tpu.memory_space<vmem>>, vector<1x8x4xf32>
    %11 = vector.shape_cast %10 : vector<1x8x4xf32> to vector<8x4xf32>
    %cst_11 = arith.constant dense<0.000000e+00> : vector<8x128xf32>
    %12 = tpu.matmul %11, %5, %cst_11 {dimension_numbers = #tpu.dot_dimension_numbers<[1], [0], [0], [1], [0, 0, 1, 1], [], []>} : vector<8x4xf32>, vector<4x128xf32>, vector<8x128xf32> -> vector<8x128xf32>
    %13 = arith.addf %9, %12 : vector<8x128xf32>
    %14 = vector.extract_strided_slice %1 {offsets = [0, 1], sizes = [4, 128], strides = [1, 1]} : vector<4x130xf32> to vector<4x128xf32>
    %15 = vector.extract_strided_slice %2 {offsets = [0, 1], sizes = [4, 128], strides = [1, 1]} : vector<4x130xf32> to vector<4x128xf32>
    %c1 = arith.constant 1 : index
    %c0_12 = arith.constant 0 : index
    %c0_13 = arith.constant 0 : index
    %16 = vector.load %arg3[%c1, %c0_12, %c0_13] : memref<3x8x4xf32, #tpu.memory_space<vmem>>, vector<1x8x4xf32>
    %17 = vector.shape_cast %16 : vector<1x8x4xf32> to vector<8x4xf32>
    %cst_14 = arith.constant dense<0.000000e+00> : vector<8x128xf32>
    %18 = tpu.matmul %17, %14, %cst_14 {dimension_numbers = #tpu.dot_dimension_numbers<[1], [0], [0], [1], [0, 0, 1, 1], [], []>} : vector<8x4xf32>, vector<4x128xf32>, vector<8x128xf32> -> vector<8x128xf32>
    %19 = arith.addf %13, %18 : vector<8x128xf32>
    %c1_15 = arith.constant 1 : index
    %c0_16 = arith.constant 0 : index
    %c0_17 = arith.constant 0 : index
    %20 = vector.load %arg4[%c1_15, %c0_16, %c0_17] : memref<3x8x4xf32, #tpu.memory_space<vmem>>, vector<1x8x4xf32>
    %21 = vector.shape_cast %20 : vector<1x8x4xf32> to vector<8x4xf32>
    %cst_18 = arith.constant dense<0.000000e+00> : vector<8x128xf32>
    %22 = tpu.matmul %21, %15, %cst_18 {dimension_numbers = #tpu.dot_dimension_numbers<[1], [0], [0], [1], [0, 0, 1, 1], [], []>} : vector<8x4xf32>, vector<4x128xf32>, vector<8x128xf32> -> vector<8x128xf32>
    %23 = arith.addf %19, %22 : vector<8x128xf32>
    %24 = vector.extract_strided_slice %1 {offsets = [0, 2], sizes = [4, 128], strides = [1, 1]} : vector<4x130xf32> to vector<4x128xf32>
    %25 = vector.extract_strided_slice %2 {offsets = [0, 2], sizes = [4, 128], strides = [1, 1]} : vector<4x130xf32> to vector<4x128xf32>
    %c2 = arith.constant 2 : index
    %c0_19 = arith.constant 0 : index
    %c0_20 = arith.constant 0 : index
    %26 = vector.load %arg3[%c2, %c0_19, %c0_20] : memref<3x8x4xf32, #tpu.memory_space<vmem>>, vector<1x8x4xf32>
    %27 = vector.shape_cast %26 : vector<1x8x4xf32> to vector<8x4xf32>
    %cst_21 = arith.constant dense<0.000000e+00> : vector<8x128xf32>
    %28 = tpu.matmul %27, %24, %cst_21 {dimension_numbers = #tpu.dot_dimension_numbers<[1], [0], [0], [1], [0, 0, 1, 1], [], []>} : vector<8x4xf32>, vector<4x128xf32>, vector<8x128xf32> -> vector<8x128xf32>
    %29 = arith.addf %23, %28 : vector<8x128xf32>
    %c2_22 = arith.constant 2 : index
    %c0_23 = arith.constant 0 : index
    %c0_24 = arith.constant 0 : index
    %30 = vector.load %arg4[%c2_22, %c0_23, %c0_24] : memref<3x8x4xf32, #tpu.memory_space<vmem>>, vector<1x8x4xf32>
    %31 = vector.shape_cast %30 : vector<1x8x4xf32> to vector<8x4xf32>
    %cst_25 = arith.constant dense<0.000000e+00> : vector<8x128xf32>
    %32 = tpu.matmul %31, %25, %cst_25 {dimension_numbers = #tpu.dot_dimension_numbers<[1], [0], [0], [1], [0, 0, 1, 1], [], []>} : vector<8x4xf32>, vector<4x128xf32>, vector<8x128xf32> -> vector<8x128xf32>
    %33 = arith.addf %29, %32 : vector<8x128xf32>
    %c0_26 = arith.constant 0 : index
    %c0_27 = arith.constant 0 : index
    %34 = vector.load %arg5[%c0_26, %c0_27] : memref<8x1xf32, #tpu.memory_space<vmem>>, vector<8x1xf32>
    %35 = vector.broadcast %34 : vector<8x1xf32> to vector<8x128xf32>
    %36 = arith.addf %33, %35 : vector<8x128xf32>
    %c0_28 = arith.constant 0 : index
    %c0_29 = arith.constant 0 : index
    %c0_30 = arith.constant 0 : index
    %37 = vector.load %arg6[%c0_28, %c0_29, %c0_30] : memref<1x8x128xf32, #tpu.memory_space<vmem>>, vector<1x8x128xf32>
    %38 = vector.shape_cast %37 : vector<1x8x128xf32> to vector<8x128xf32>
    %39 = vector.shape_cast %36 : vector<8x128xf32> to vector<1x8x128xf32>
    tpu.vector_store %arg6[%c0_28, %c0_29, %c0_30], %39 {strides = array<i32>} : memref<1x8x128xf32, #tpu.memory_space<vmem>>, vector<1x8x128xf32>,
    return
  }
  func.func @transform_0(%arg0: i32) -> (i32, i32, i32) {
    %c0_i32 = arith.constant 0 : i32
    %c0_i32_0 = arith.constant 0 : i32
    %c0_i32_1 = arith.constant 0 : i32
    return %arg0, %c0_i32, %c0_i32_0 : i32, i32, i32
  }
  func.func @transform_1(%arg0: i32) -> (i32, i32) {
    %c0_i32 = arith.constant 0 : i32
    %c0_i32_0 = arith.constant 0 : i32
    %c0_i32_1 = arith.constant 0 : i32
    return %c0_i32, %c0_i32_0 : i32, i32
  }
  func.func @transform_2(%arg0: i32) -> (i32, i32, i32) {
    %c0_i32 = arith.constant 0 : i32
    %c0_i32_0 = arith.constant 0 : i32
    %c0_i32_1 = arith.constant 0 : i32
    %c0_i32_2 = arith.constant 0 : i32
    return %c0_i32, %c0_i32_0, %c0_i32_1 : i32, i32, i32
  }
  func.func @transform_3(%arg0: i32) -> (i32, i32, i32) {
    %c0_i32 = arith.constant 0 : i32
    %c0_i32_0 = arith.constant 0 : i32
    %c0_i32_1 = arith.constant 0 : i32
    %c0_i32_2 = arith.constant 0 : i32
    return %c0_i32, %c0_i32_0, %c0_i32_1 : i32, i32, i32
  }
  func.func @transform_4(%arg0: i32) -> (i32, i32) {
    %c0_i32 = arith.constant 0 : i32
    %c0_i32_0 = arith.constant 0 : i32
    %c0_i32_1 = arith.constant 0 : i32
    return %c0_i32, %c0_i32_0 : i32, i32
  }
  func.func @transform_5(%arg0: i32) -> (i32, i32, i32) {
    %c0_i32 = arith.constant 0 : i32
    %c0_i32_0 = arith.constant 0 : i32
    %c0_i32_1 = arith.constant 0 : i32
    return %arg0, %c0_i32, %c0_i32_0 : i32, i32, i32
  }
}

</mosaic_0001>

<bundles_post_ra>
// kernel: tpu_custom_call.1
= control target key start
LH: loop header
LB: loop body
LE: loop exit
PB: predicated region body
PF: predicated region fallthrough
CT: control target
= control target key end

     0   :  { %10 = vsyncpa [#allocation3], 0  ;;  %s1146_s0 = inlined_call_operand.vmem [shape: f32[2,4,130], index: 0, kind: input, shape index: {}]   ;;  %s1147_s1 = inlined_call_operand.vmem [shape: f32[4,130], index: 1, kind: input, shape index: {}]   ;;  %s1148_s2 = inlined_call_operand.vmem [shape: f32[3,8,4], index: 2, kind: input, shape index: {}]   ;;  %s1149_s3 = inlined_call_operand.vmem [shape: f32[3,8,4], index: 3, kind: input, shape index: {}]   ;;  %s1150_s4 = inlined_call_operand.vmem [shape: f32[8,1], index: 4, kind: input, shape index: {}]   ;;  %s1151_s5 = inlined_call_operand.hbm [shape: f32[2,8,128], index: 5, kind: output, shape index: {}]  }
   0x1   :  { %12 = vsyncpa [#allocation3 + $0x1], 0  ;;  %s1013_s18 = smov 0   ;;  %s1015_s19 = smov 0  }
   0x2   :  { %s1017_s20 = smov 0   ;;  %s1019_s21 = smov 0  }
   0x3 LB: > { %s1034_s22 = sadd.s32 4294967295, %s975_s21   ;;  %s798_s23 = sadd.s32 4294967294, %s975_s21   ;;  %s975_s21 = sphi %s1019_s21, %s1157_s21   ;;  %s971_s20 = sphi %s1017_s20, %s1156_s20   ;;  %s967_s19 = sphi %s1015_s19, %s1155_s19   ;;  %s963_s18 = sphi %s1013_s18, %s1154_s18  }
   0x4   : > { %s1038_s24 = sadd.s32 1, %s975_s21   ;;  %s135_s25 = sadd.s32 1, %s971_s20 }
   0x5   : > { %s132_s26 = ssub.s32 %s975_s21, %s1038_s24  ;;  %p145_p0 = scmp.ne.s32.totalorder %s971_s20, %s967_s19 }
   0x6   : > { %p133_p1 = scmp.eq.s32.totalorder %s132_s26, 0  ;;  %p146_p2 = scmp.eq.s32.totalorder %s1034_s22, 1 }
   0x7   : > { %p151_p3 = scmp.ne.s32.totalorder %s967_s19, %s963_s18  ;;  %p152_p4 = scmp.eq.s32.totalorder %s798_s23, 1 }
   0x8   : > { %s1049_s27 = scalar_select %p133_p1, %s971_s20, %s135_s25  }
   0x9   : > { %p1051_p5 = por %p146_p2, %p145_p0  ;;  %p1055_p6 = por %p152_p4, %p151_p3 }
   0xa   : > { %p801_p7 = scmp.ge.s32.totalorder %s975_s21, 1  ;;  %p190_p8 = scmp.lt.s32.totalorder %s975_s21, 3 }
   0xc   : > { %p191_p9 = pnand %p801_p7, %p190_p8 }
   0xd   : > { %p218_p10 = scmp.lt.s32.totalorder (!%p191_p9), %s1034_s22, 1  ;;  %s977_s7 = smov (!%p191_p9), 127  }
   0xe   : > { %194 = sbr.rel (%p191_p9) target bundleno = 364 (0x16c), region = 40  ;;  %s980_s17 = smov (!%p191_p9), 126  }
   0xf   : > { %s215_s12 = sand.u32 (!%p191_p9), 1, %s967_s19   ;;  %s982_s6 = smov (!%p191_p9), [#allocation2]  }
  0x10   : > { %s802_s13 = sshll.u32 (!%p191_p9), %s215_s12, 3  ;;  %s726_s26 = scalar_lea.sflag (!%p191_p9), [#allocation3], %s215_s12 }
  0x11   : > { %s217_s15 = scalar_lea.vmem (!%p191_p9), [#allocation2], %s802_s13 }
  0x12   : > { %s739_s16 = sshll.u32 (!%p191_p9), %s217_s15, 4  ;;  %s740_s16 = int_to_ptr.vmem [resolvable:$true] %s739_s16 }
  0x13   : > { %v224_v0 = vld [vmem:[%s1147_s1] sm:$0xff]  ;;  %v978_v2 = vmov 0.0   ;;  %vm227_vm0 = vcmask 31744   ;;  %s219_s10 = scalar_select %p218_p10, %s1034_s22, 1  ;;  %vm231_vm1 = vcmask 1043456   ;;  %vm979_vm2 = vmmov 0  }
  0x14   : > { %469 = vrot.lane.b32.xlu1 %v224_v0, %s977_s7  ;;  %v468_v1 = vcombine.high %v224_v0, %v224_v0  ;;  %843 = vmatprep.subr.mxu1 %v978_v2  ;;  %v226_v3 = vld [vmem:[%s1149_s3] sm:$0xff]  ;;  %v981_v7 = vmov 0   ;;  %vm388_vm3 = vcmask 1039360   ;;  %v812_v11 = vld [vmem:[%s1149_s3 + $0x8] sm:$0xff]  ;;  %vm556_vm4 = vcmask 1031168   ;;  %v815_v19 = vld [vmem:[%s1148_s2 + $0x10] sm:$0xff] }
  0x15   : > { %845 = vmatprep.mubr.msk.f32.mxu1 %vm979_vm2, %v978_v2  ;;  %838 = vmatprep.subr.mxu0 %v978_v2  ;;  %s825_s11 = sshll.u32 %s219_s10, 3  ;;  %v225_v4 = vld [vmem:[%s1148_s2] sm:$0xff]  ;;  %v809_v16 = vld [vmem:[%s1148_s2 + $0x8] sm:$0xff]  ;;  %v818_v23 = vld [vmem:[%s1149_s3 + $0x10] sm:$0xff]  ;;  %s915_s30 = scalar_lea.vmem %s740_s16, 128 }
  0x16   : > { %839 = vmatpush3.msk.msra.mxu0 %vm231_vm1, %v224_v0  ;;  %840 = vmatprep.mubr.msk.f32.mxu0 %vm979_vm2, %v978_v2  ;;  %s222_s14 = scalar_lea.vmem %s1146_s0, %s825_s11  ;;  %v717_v8 = vld [vmem:[%s1150_s4] sm:$0xff]  ;;  %p916_p11 = scmp.ne.s32.totalorder %s740_s16, %s915_s30 }
  0x17   : > { %848 = vmatprep.subr.mxu0 %v978_v2  ;;  %841 = vmatmul.mubr.msk.f32.vlgmr.msra.gmra.mxu0 %vm227_vm0, %v226_v3  ;;  %v223_v5 = vld [vmem:[%s222_s14] sm:$0xff]  ;;  %s822_s14 = sshll.u32 %s1034_s22, 7 }
  0x18   : > { %471 = vrot.lane.b32.xlu1 %v468_v1, %s977_s7  ;;  %850 = vmatprep.mubr.msk.f32.mxu0 %vm979_vm2, %v978_v2  ;;  %v383_v6 = vcombine.high %v223_v5, %v223_v5  ;;  %s737_s25 = scalar_lea.hbm %s1151_s5, %s822_s14  ;;  %p917_p12 = pnand %p916_p11, %p1051_p5 }
  0x19   : > { %384 = vrot.lane.b32.xlu0 %v223_v5, %s977_s7  ;;  %844 = vmatpush3.msk.msra.mxu1 %vm231_vm1, %v223_v5 }
  0x1a   : > { %853 = vmatprep.subr.mxu1 %v978_v2  ;;  %846 = vmatmul.mubr.msk.f32.vlgmr.msra.gmra.mxu1 %vm227_vm0, %v225_v4  ;;  %p918_p13 = pneg %p917_p12 }
  0x1b   : > { %855 = vmatprep.mubr.msk.f32.mxu1 %vm979_vm2, %v978_v2  ;;  %912 = vset.pattern.permute.xlu0 %v981_v7 }
  0x1c   : > { %554 = vrot.lane.b32.xlu1 %v383_v6, %s980_s17 }
  0x1d   : > { %386 = vrot.lane.b32.xlu0 %v383_v6, %s977_s7  ;;  %s919_s7 = sshll.u32 %s982_s6, 4  ;;  %s920_s7 = int_to_ptr.vmem [resolvable:$false] %s919_s7 }
  0x1e   : > { %s921_s22 = scalar_lea.vmem %s920_s7, 256  ;;  %p922_p0 = scmp.lt.s32.totalorder %s740_s16, %s920_s7 }
  0x1f   : > { %p923_p1 = scmp.lt.s32.totalorder %s921_s22, %s915_s30 }
  0x20   : > { %638 = vrot.lane.b32.xlu1 %v468_v1, %s980_s17 }
  0x21   : > { %552 = vrot.lane.b32.xlu0 %v223_v5, %s980_s17  ;;  %p924_p2 = por %p923_p1, %p922_p0 }
  0x23   : > { %p925_p3 = pnand %p924_p2, %p918_p13 }
  0x25   : > { %636 = vrot.lane.b32.xlu0 %v224_v0, %s980_s17 }
  0x29   : > { %720 = vperm.xlu0 %912, %v717_v8  }
  0x86   : > { %v470_v9 = vpop.permute.xlu1 %469 }
  0x8a   : > { %v472_v10 = vpop.permute.xlu1 %471 }
  0x8b   : > { %v473_v12 = vsel %vm388_vm3, %v470_v9, %v472_v10  ;;  %v385_v13 = vpop.permute.xlu0 %384 }
  0x8c   : > { %854 = vmatpush3.msk.msra.mxu1 %vm231_vm1, %v473_v12 }
  0x8d   : > { %856 = vmatmul.mubr.msk.f32.vlgmr.msra.gmra.mxu1 %vm227_vm0, %v812_v11  ;;  %863 = vmatprep.subr.mxu1 %v978_v2 }
  0x8e   : > { %865 = vmatprep.mubr.msk.f32.mxu1 %vm979_vm2, %v978_v2  ;;  %v555_v15 = vpop.permute.xlu1 %554 }
  0x8f   : > { %v387_v14 = vpop.permute.xlu0 %386 }
  0x90   : > { %v389_v17 = vsel %vm388_vm3, %v385_v13, %v387_v14 }
  0x91   : > { %849 = vmatpush3.msk.msra.mxu0 %vm231_vm1, %v389_v17 }
  0x92   : > { %858 = vmatprep.subr.mxu0 %v978_v2  ;;  %851 = vmatmul.mubr.msk.f32.vlgmr.msra.gmra.mxu0 %vm227_vm0, %v809_v16  ;;  %v639_v21 = vpop.permute.xlu1 %638 }
  0x93   : > { %v553_v18 = vpop.permute.xlu0 %552  ;;  %860 = vmatprep.mubr.msk.f32.mxu0 %vm979_vm2, %v978_v2 }
  0x94   : > { %v557_v20 = vsel %vm556_vm4, %v553_v18, %v555_v15 }
  0x95   : > { %859 = vmatpush3.msk.msra.mxu0 %vm231_vm1, %v557_v20 }
  0x96   : > { %861 = vmatmul.mubr.msk.f32.vlgmr.msra.gmra.mxu0 %vm227_vm0, %v815_v19 }
  0x97   : > { %v637_v22 = vpop.permute.xlu0 %636 }
  0x98   : > { %v640_v24 = vsel %vm556_vm4, %v637_v22, %v639_v21 }
  0x99   : > { %864 = vmatpush3.msk.msra.mxu1 %vm231_vm1, %v640_v24 }
  0x9a   : > { %866 = vmatmul.mubr.msk.f32.vlgmr.msra.gmra.mxu1 %vm227_vm0, %v818_v23 }
  0xa4   : > { %v721_v40 = vpop.permute.xlu0 %720 }
  0xd7   : > { %v301_v25 = vpop.f32.mrf.mxu0 }
  0xd9   : > { %v842_v26 = vpop.f32.mrf.mxu0 }
  0xda   : > { %v377_v27 = vpop.f32.mrf.mxu1 }
  0xdb   : > { %v378_v28 = vadd.f32 %v377_v27, %v301_v25 }
  0xdc   : > { %v847_v29 = vpop.f32.mrf.mxu1 }
 0x14d   : > { %v545_v30 = vpop.f32.mrf.mxu1 }
 0x14f   : > { %v857_v31 = vpop.f32.mrf.mxu1 }
 0x152   : > { %v461_v32 = vpop.f32.mrf.mxu0 }
 0x153   : > { %v465_v33 = vadd.f32 %v461_v32, %v378_v28 }
 0x154   : > { %v852_v34 = vpop.f32.mrf.mxu0 }
 0x155   : > { %v549_v35 = vadd.f32 %v545_v30, %v465_v33 }
 0x156   : > { %v629_v36 = vpop.f32.mrf.mxu0 }
 0x157   : > { %v633_v38 = vadd.f32 %v629_v36, %v549_v35 }
 0x158   : > { %v862_v37 = vpop.f32.mrf.mxu0 }
 0x15a   : > { %v712_v39 = vpop.f32.mrf.mxu1 }
 0x15b   : > { %v716_v41 = vadd.f32 %v712_v39, %v633_v38 }
 0x15c   : > { %v867_v42 = vpop.f32.mrf.mxu1 }
 0x15d   : > { %v723_v43 = vadd.f32 %v721_v40, %v716_v41 }
 0x15f   : > { %724 = vst [vmem:[%s217_s15] sm:$0xff] %v723_v43 }
 0x160   : > { %928 = shalt.err (!%p925_p3)
}
 0x161   : > { %s929_s8 = scalar_lea.hbm %s737_s25, 128  ;;  %s933_s11 = scalar_lea.hbm %s1151_s5, 256 }
 0x162   : > { %p930_p4 = scmp.ne.s32.totalorder %s737_s25, %s929_s8  ;;  %p934_p9 = scmp.lt.s32.totalorder %s737_s25, %s1151_s5 }
 0x163   : > { %p935_p10 = scmp.lt.s32.totalorder %s933_s11, %s929_s8 }
 0x164   : > { %p931_p7 = pnand %p930_p4, %p1051_p5 }
 0x165   : > { %p936_p11 = por %p935_p10, %p934_p9 }
 0x166   : > { %p932_p8 = pneg %p931_p7 }
 0x168   : > { %p937_p12 = pnand %p936_p11, %p932_p8 }
 0x16a   : > { %940 = shalt.err (!%p937_p12)
}
 0x16b   : > { %868 = dma.vmem_to_hbm [thread:$0]  (%p1051_p5), %s740_s16, 128, %s737_s25, %s726_s26  }
 0x16c PF: > { %p874_p13 = scmp.ge.s32.totalorder %s975_s21, 2  ;;  %s751_s14 = sand.u32 1, %s963_s18  }
 0x16d   : > { %s752_s15 = scalar_lea.sflag [#allocation3], %s751_s14 }
 0x16e   : > { %p871_p0 = pnand %p874_p13, %p1055_p6 }
 0x170   : > { %p872_p1 = pneg %p871_p0 }
 0x172   : > { %958 = dma.done.wait (%p872_p1), %s752_s15, 128  }
 0x173   : > { %960 = vsyncadd (%p872_p1), %s752_s15, 4294967168  ;;  %p15_p2 = scmp.ge.s32.totalorder %s1038_s24, 4   ;;  %s1154_s18 = smov %s967_s19 }
 0x174   : > { %s1155_s19 = smov %s971_s20  ;;  %s1156_s20 = smov %s1049_s27 }
 0x175   : > { %s1157_s21 = smov %s1038_s24  ;;  %17 = sbr.rel (!%p15_p2) target bundleno = 3 (0x3), region = 79 }
 0x17a   :  { %757 = vsyncpa [#allocation3], 1 }
 0x17b   :  { %759 = vsyncpa [#allocation3 + $0x1], 1 }

</bundles_post_ra>
